<compile_context>
chip_gen: v5e
topology: v5e:2x2
jax: 0.10.0
libtpu: 0.0.40
codegen_flags: <defaults>
</compile_context>

<pallas_src>
import functools

import jax
import jax.numpy as jnp
import numpy as np
from jax import lax
from jax.experimental import pallas as pl
from jax.experimental.pallas import tpu as pltpu

MAX_NODE = 8            # max_node_num
MAX_SER = 8             # max_ser_set
ATT = 4                 # att_num
HIDDEN = [128, 128, 64]
NEG_INF = -1e9          # additive mask bias; for |logit| < 32 this rounds to
                        # exactly -1e9 in f32, i.e. identical to masked_fill.
RACE_NEG = -1e30        # race value on masked slots: can never win the argmax

IN_DIM = MAX_NODE * (MAX_NODE + MAX_SER * ATT) + ATT        # 324
IN_PAD = 384            # input features padded to a multiple of 128 (zeros)
H1, H2 = 128, 128
H3 = 64
H3_PAD = 128            # layer-3 width padded to a full lane register
OUT = MAX_NODE * MAX_SER                                    # 64


def _round_up(x, m):
    return ((x + m - 1) // m) * m


def _silu(x):
    # x * sigmoid(x); the EUP approximate reciprocal keeps the 3x(tb,128)
    # activations off the full-precision divide path (co-issues with MXU work).
    return x * pl.reciprocal(1.0 + jnp.exp(-x), approx=True)


def _mlp_decision_kernel(x_ref, w1_ref, w2_ref, w3_ref, w4_ref, bias_ref,
                         slab_ref, idx_ref, prob_ref, *, n, s):
    tb = x_ref.shape[0]
    b = bias_ref[...]                                    # (8, 128) f32 bias slab

    # ---- MLP: bf16 operands on the MXU, f32 accumulation / element-wise. ----
    x = x_ref[...]                                       # (tb, IN_PAD) bf16 (cast in wrapper)
    h = _silu(jnp.dot(x, w1_ref[...],
                      preferred_element_type=jnp.float32) + b[0:1, :])
    h = _silu(jnp.dot(h.astype(jnp.bfloat16), w2_ref[...],
                      preferred_element_type=jnp.float32) + b[1:2, :])
    h = _silu(jnp.dot(h.astype(jnp.bfloat16), w3_ref[...],
                      preferred_element_type=jnp.float32) + b[2:3, :])

    # Final layer is duplicated (w4d = [w4 | w4]) so one matmul + one add gives,
    # lane-dense in a single (tb, 128) row:
    #   lanes   0- 63 : masked logits  (raw logits + additive mask bias)
    #   lanes  64-127 : race values    (raw logits + Gumbel noise / -1e30)
    pay = (jnp.dot(h.astype(jnp.bfloat16), w4_ref[...],
                   preferred_element_type=jnp.float32)
           + b[3:4, :] + slab_ref[...])                  # (tb, 128) f32

    # ---- Transpose once so batch lives in the lane dimension; the whole
    #      softmax / Gumbel-max tail then runs on fully lane-dense vregs and
    #      the per-node (s=8) reductions are cheap sublane reductions. ----
    pay_t = pay.T                                        # (128, tb)
    lt = pay_t[:OUT].reshape(n, s, tb)                   # masked logits
    rt = pay_t[OUT:].reshape(n, s, tb)                   # logits + Gumbel

    m = jnp.max(lt, axis=1, keepdims=True)               # (n, 1, tb)
    e = jnp.exp(lt - m)                                  # masked slots -> 0
    se = jnp.sum(e, axis=1, keepdims=True)               # (n, 1, tb)

    # Gumbel-max: argmax_k (logit_k + G_k) ~ Categorical(softmax(logits)).
    rmax = jnp.max(rt, axis=1, keepdims=True)
    sio = lax.broadcasted_iota(jnp.int32, (n, s, tb), 1)
    idx = jnp.min(jnp.where(rt >= rmax, sio, s), axis=1)             # (n, tb)

    # select_prob = softmax(logits)[idx] = e[idx] / sum(e); no full probs array.
    e_sel = jnp.sum(jnp.where(sio == idx[:, None, :], e, 0.0), axis=1)
    sel = e_sel * pl.reciprocal(se[:, 0, :], approx=True)            # (n, tb)

    idx_ref[...] = idx.astype(jnp.int32)                 # (n, tile), lane-dense stores
    prob_ref[...] = sel


def make_params(key, in_dim=IN_DIM, hidden=HIDDEN, out_dim=OUT):
    """Deterministic nn.Linear-style init; weights stored as (in, out), f32."""
    dims = [in_dim] + list(hidden) + [out_dim]
    params = []
    for i in range(len(dims) - 1):
        key, kw, kb = jax.random.split(key, 3)
        bound = 1.0 / np.sqrt(dims[i])
        w = jax.random.uniform(kw, (dims[i], dims[i + 1]), jnp.float32, -bound, bound)
        bv = jax.random.uniform(kb, (dims[i + 1],), jnp.float32, -bound, bound)
        params += [w, bv]
    return params


def pack_params(params):
    """Pad / cast the 4 Linear layers into the kernel layout.

    Weights -> bf16, zero-padded for lane/MXU friendliness:
      w1: (IN_PAD, 128)  w2: (128, 128)  w3: (128, 128)
      w4d: (128, 128) = [w4 | w4]  (logits copy | race copy)
    Biases -> one (8, 128) f32 slab; row 3 carries b4 twice (lanes 0-63, 64-127).
    Padding is exact: silu(0) = 0 and the padded w4 rows are zero.
    """
    w1, b1, w2, b2, w3, b3, w4, b4 = params
    w1p = jnp.zeros((IN_PAD, H1), jnp.float32).at[:w1.shape[0], :].set(w1)
    w3p = jnp.zeros((H2, H3_PAD), jnp.float32).at[:, :H3].set(w3)
    w4p = jnp.zeros((H3_PAD, OUT), jnp.float32).at[:H3, :].set(w4)
    w4d = jnp.concatenate([w4p, w4p], axis=1)            # (128, 128)
    bias = jnp.zeros((8, 128), jnp.float32)
    bias = bias.at[0, :H1].set(b1)
    bias = bias.at[1, :H2].set(b2)
    bias = bias.at[2, :H3].set(b3)
    bias = bias.at[3, :OUT].set(b4)
    bias = bias.at[3, OUT:].set(b4)
    return (w1p.astype(jnp.bfloat16), w2.astype(jnp.bfloat16),
            w3p.astype(jnp.bfloat16), w4d.astype(jnp.bfloat16), bias)


def _choose_tile(batch, tile_b):
    """Pick the batch tile.  bf16 x needs a multiple of 16 on the sublane dim;
    because outputs are stored batch-in-lanes, any block smaller than the full
    padded array must be a multiple of 128.  When there is enough work we keep
    >= 2 grid steps so the 'parallel' batch axis shards across both v7x TCs."""
    b16 = _round_up(batch, 16)
    if b16 <= 256:
        return b16, b16                      # single block == full array
    want = max(128, min(tile_b, b16))
    steps = max(2, -(-b16 // want))
    tile = _round_up(-(-b16 // steps), 128)
    return tile, _round_up(b16, tile)


def naive_mlp_decision(tasks, constraints, masks, packed, key,
                       topologicals=None, *, tile_b=512):
    """Forward pass of NaiveMLPDecision -> (ser_idx, select_prob).

    `topologicals` is accepted for signature parity with the PyTorch module but
    (as in the original) unused.  tile_b=512 is a good default on all
    generations (use 256 on v5e if tuning; <=2048 keeps v7x VMEM happy).
    """
    del topologicals
    w1, w2, w3, w4d, bias = packed
    B = tasks.shape[0]
    N, S = MAX_NODE, MAX_SER

    # Inputs are compressed before they hit the HBM->VMEM pipeline:
    #   x    : bf16, zero-padded to IN_PAD lanes
    #   slab : one lane-dense (B, 128) f32 block (mask bias | Gumbel noise)
    x = jnp.concatenate([tasks.reshape(B, -1), constraints], axis=-1)
    x = jnp.pad(x.astype(jnp.bfloat16), ((0, 0), (0, IN_PAD - x.shape[1])))

    valid = masks.reshape(B, N * S) != 0
    mask_bias = jnp.where(valid, 0.0, jnp.float32(NEG_INF))
    e_noise = jnp.maximum(jax.random.exponential(key, (B, N * S), jnp.float32),
                          1e-20)                         # clamp: -log() stays finite
    gumbel = jnp.where(valid, -jnp.log(e_noise), jnp.float32(RACE_NEG))
    slab = jnp.concatenate([mask_bias, gumbel], axis=-1).astype(jnp.float32)

    tile, b_pad = _choose_tile(B, tile_b)
    if b_pad != B:
        pad = b_pad - B
        x = jnp.pad(x, ((0, pad), (0, 0)))
        slab = jnp.pad(slab, ((0, pad), (0, 0)))         # padded rows are harmless

    kernel = functools.partial(_mlp_decision_kernel, n=N, s=S)
    grid = (b_pad // tile,)

    const = lambda i: (0, 0)        # parameters: DMA'd once, VMEM-resident
    row = lambda i: (i, 0)          # batch-tiled inputs
    col = lambda i: (0, i)          # batch-in-lanes outputs

    idx_t, prob_t = pl.pallas_call(
        kernel,
        grid=grid,
        in_specs=[
            pl.BlockSpec((tile, IN_PAD), row),          # x (bf16)
            pl.BlockSpec((IN_PAD, H1), const),          # w1 (bf16)
            pl.BlockSpec((H1, H2), const),              # w2 (bf16)
            pl.BlockSpec((H2, H3_PAD), const),          # w3 (bf16, padded)
            pl.BlockSpec((H3_PAD, 2 * OUT), const),     # w4d = [w4 | w4] (bf16)
            pl.BlockSpec((8, 128), const),              # packed biases (f32)
            pl.BlockSpec((tile, 128), row),             # merged mask/Gumbel slab (f32)
        ],
        out_specs=(pl.BlockSpec((N, tile), col),
                   pl.BlockSpec((N, tile), col)),
        out_shape=(jax.ShapeDtypeStruct((N, b_pad), jnp.int32),
                   jax.ShapeDtypeStruct((N, b_pad), jnp.float32)),
        compiler_params=pltpu.CompilerParams(
            dimension_semantics=("parallel",)),          # both TCs on v7x
    )(x, w1, w2, w3, w4d, bias, slab)

    # Kernel outputs are (node, batch); flip back to the module's (batch, node).
    return idx_t[:, :B].T, prob_t[:, :B].T


def _ref_probs(tasks, constraints, masks, packed):
    """Pure-JAX reference of the deterministic path (logits -> softmax) using
    the same packed bf16 parameters (exact SiLU divide, exact masked_fill)."""
    w1, w2, w3, w4d, bias = packed
    B = tasks.shape[0]
    silu = lambda v: v / (1.0 + jnp.exp(-v))
    x = jnp.concatenate([tasks.reshape(B, -1), constraints], -1)
    x = jnp.pad(x.astype(jnp.bfloat16), ((0, 0), (0, IN_PAD - x.shape[1])))
    h = silu(jnp.dot(x, w1, preferred_element_type=jnp.float32) + bias[0:1, :])
    h = silu(jnp.dot(h.astype(jnp.bfloat16), w2,
                     preferred_element_type=jnp.float32) + bias[1:2, :])
    h = silu(jnp.dot(h.astype(jnp.bfloat16), w3,
                     preferred_element_type=jnp.float32) + bias[2:3, :])
    logits = (jnp.dot(h.astype(jnp.bfloat16), w4d[:, :OUT],
                      preferred_element_type=jnp.float32) + bias[3:4, :OUT])
    logits = logits.reshape(B, MAX_NODE, MAX_SER)
    logits = jnp.where(masks == 0, jnp.float32(NEG_INF), logits)
    return jax.nn.softmax(logits, -1)


if __name__ == "__main__":
    key = jax.random.PRNGKey(0)
    k_tasks, k_con, k_mask, k_param, k_sample = jax.random.split(key, 5)

    B = 2
    tasks = jax.random.normal(k_tasks, (B, MAX_NODE, MAX_NODE + MAX_SER * ATT),
                              dtype=jnp.float32)
    constraints = jax.random.normal(k_con, (B, ATT), dtype=jnp.float32)
    masks = jax.random.bernoulli(k_mask, 0.7, (B, MAX_NODE, MAX_SER)).astype(jnp.int32)
    masks = masks.at[:, :, 0].set(1)     # at least one valid service per node
    params = make_params(k_param)
    packed = pack_params(params)

    ser_idx, select_prob = naive_mlp_decision(tasks, constraints, masks, packed, k_sample)
    jax.block_until_ready((ser_idx, select_prob))

    # Consistency checks against the pure-JAX reference of the deterministic
    # path (tolerance covers the approximate-reciprocal SiLU / softmax scale).
    probs_ref = _ref_probs(tasks, constraints, masks, packed)
    gathered = jnp.take_along_axis(probs_ref, ser_idx[..., None], axis=-1)[..., 0]
    np.testing.assert_allclose(np.asarray(select_prob), np.asarray(gathered),
                               rtol=2e-2, atol=1e-5)
    picked_mask = jnp.take_along_axis(masks, ser_idx[..., None], axis=-1)[..., 0]
    assert bool(jnp.all(picked_mask == 1)), "sampled a masked-out service"
    assert bool(jnp.all((ser_idx >= 0) & (ser_idx < MAX_SER)))
    assert ser_idx.shape == (B, MAX_NODE) and select_prob.shape == (B, MAX_NODE)
    assert ser_idx.dtype == jnp.int32

    print("KERNEL_OK")
</pallas_src>

<mosaic_0001>
module attributes {stable_mosaic.version = 11 : i64} {
  func.func @_mlp_decision_kernel(%arg0: i32, %arg1: memref<16x384xbf16, #tpu.memory_space<vmem>>, %arg2: memref<384x128xbf16, #tpu.memory_space<vmem>>, %arg3: memref<128x128xbf16, #tpu.memory_space<vmem>>, %arg4: memref<128x128xbf16, #tpu.memory_space<vmem>>, %arg5: memref<128x128xbf16, #tpu.memory_space<vmem>>, %arg6: memref<8x128xf32, #tpu.memory_space<vmem>>, %arg7: memref<16x128xf32, #tpu.memory_space<vmem>>, %arg8: memref<8x16xi32, #tpu.memory_space<vmem>>, %arg9: memref<8x16xf32, #tpu.memory_space<vmem>>) attributes {dimension_semantics = [#tpu.dimension_semantics<parallel>], iteration_bounds = array<i64: 1>, scalar_prefetch = 0 : i64, scratch_operands = 0 : i64, tpu.core_type = #tpu.core_type<tc>, window_params = [{transform_indices = @transform_0, window_bounds = array<i64: 16, 384>}, {pipeline_mode = #tpu.pipeline_mode<synchronous>, transform_indices = @transform_1, window_bounds = array<i64: 384, 128>}, {pipeline_mode = #tpu.pipeline_mode<synchronous>, transform_indices = @transform_2, window_bounds = array<i64: 128, 128>}, {pipeline_mode = #tpu.pipeline_mode<synchronous>, transform_indices = @transform_3, window_bounds = array<i64: 128, 128>}, {pipeline_mode = #tpu.pipeline_mode<synchronous>, transform_indices = @transform_4, window_bounds = array<i64: 128, 128>}, {pipeline_mode = #tpu.pipeline_mode<synchronous>, transform_indices = @transform_5, window_bounds = array<i64: 8, 128>}, {transform_indices = @transform_6, window_bounds = array<i64: 16, 128>}, {transform_indices = @transform_7, window_bounds = array<i64: 8, 16>}, {transform_indices = @transform_8, window_bounds = array<i64: 8, 16>}]} {
    %c0 = arith.constant 0 : index
    %c0_0 = arith.constant 0 : index
    %0 = vector.load %arg6[%c0, %c0_0] : memref<8x128xf32, #tpu.memory_space<vmem>>, vector<8x128xf32>
    %c0_1 = arith.constant 0 : index
    %c0_2 = arith.constant 0 : index
    %1 = vector.load %arg1[%c0_1, %c0_2] : memref<16x384xbf16, #tpu.memory_space<vmem>>, vector<16x384xbf16>
    %c0_3 = arith.constant 0 : index
    %c0_4 = arith.constant 0 : index
    %2 = vector.load %arg2[%c0_3, %c0_4] : memref<384x128xbf16, #tpu.memory_space<vmem>>, vector<384x128xbf16>
    %cst = arith.constant dense<0.000000e+00> : vector<16x128xf32>
    %3 = tpu.matmul %1, %2, %cst {dimension_numbers = #tpu.dot_dimension_numbers<[1], [0], [0], [1], [0, 0, 1, 1], [], []>} : vector<16x384xbf16>, vector<384x128xbf16>, vector<16x128xf32> -> vector<16x128xf32>
    %4 = vector.extract_strided_slice %0 {offsets = [0, 0], sizes = [1, 128], strides = [1, 1]} : vector<8x128xf32> to vector<1x128xf32>
    %5 = vector.broadcast %4 : vector<1x128xf32> to vector<16x128xf32>
    %6 = arith.addf %3, %5 : vector<16x128xf32>
    %cst_5 = arith.constant 0.000000e+00 : f32
    %7 = vector.broadcast %cst_5 : f32 to vector<16x128xf32>
    %8 = arith.subf %7, %6 : vector<16x128xf32>
    %9 = math.exp %8 : vector<16x128xf32>
    %cst_6 = arith.constant 1.000000e+00 : f32
    %10 = vector.broadcast %cst_6 : f32 to vector<16x128xf32>
    %11 = arith.addf %10, %9 : vector<16x128xf32>
    %12 = tpu.reciprocal %11 {approx = true} : vector<16x128xf32> -> vector<16x128xf32>
    %13 = arith.mulf %6, %12 : vector<16x128xf32>
    %14 = arith.truncf %13 : vector<16x128xf32> to vector<16x128xbf16>
    %c0_7 = arith.constant 0 : index
    %c0_8 = arith.constant 0 : index
    %15 = vector.load %arg3[%c0_7, %c0_8] : memref<128x128xbf16, #tpu.memory_space<vmem>>, vector<128x128xbf16>
    %cst_9 = arith.constant dense<0.000000e+00> : vector<16x128xf32>
    %16 = tpu.matmul %14, %15, %cst_9 {dimension_numbers = #tpu.dot_dimension_numbers<[1], [0], [0], [1], [0, 0, 1, 1], [], []>} : vector<16x128xbf16>, vector<128x128xbf16>, vector<16x128xf32> -> vector<16x128xf32>
    %17 = vector.extract_strided_slice %0 {offsets = [1, 0], sizes = [1, 128], strides = [1, 1]} : vector<8x128xf32> to vector<1x128xf32>
    %18 = vector.broadcast %17 : vector<1x128xf32> to vector<16x128xf32>
    %19 = arith.addf %16, %18 : vector<16x128xf32>
    %cst_10 = arith.constant 0.000000e+00 : f32
    %20 = vector.broadcast %cst_10 : f32 to vector<16x128xf32>
    %21 = arith.subf %20, %19 : vector<16x128xf32>
    %22 = math.exp %21 : vector<16x128xf32>
    %cst_11 = arith.constant 1.000000e+00 : f32
    %23 = vector.broadcast %cst_11 : f32 to vector<16x128xf32>
    %24 = arith.addf %23, %22 : vector<16x128xf32>
    %25 = tpu.reciprocal %24 {approx = true} : vector<16x128xf32> -> vector<16x128xf32>
    %26 = arith.mulf %19, %25 : vector<16x128xf32>
    %27 = arith.truncf %26 : vector<16x128xf32> to vector<16x128xbf16>
    %c0_12 = arith.constant 0 : index
    %c0_13 = arith.constant 0 : index
    %28 = vector.load %arg4[%c0_12, %c0_13] : memref<128x128xbf16, #tpu.memory_space<vmem>>, vector<128x128xbf16>
    %cst_14 = arith.constant dense<0.000000e+00> : vector<16x128xf32>
    %29 = tpu.matmul %27, %28, %cst_14 {dimension_numbers = #tpu.dot_dimension_numbers<[1], [0], [0], [1], [0, 0, 1, 1], [], []>} : vector<16x128xbf16>, vector<128x128xbf16>, vector<16x128xf32> -> vector<16x128xf32>
    %30 = vector.extract_strided_slice %0 {offsets = [2, 0], sizes = [1, 128], strides = [1, 1]} : vector<8x128xf32> to vector<1x128xf32>
    %31 = vector.broadcast %30 : vector<1x128xf32> to vector<16x128xf32>
    %32 = arith.addf %29, %31 : vector<16x128xf32>
    %cst_15 = arith.constant 0.000000e+00 : f32
    %33 = vector.broadcast %cst_15 : f32 to vector<16x128xf32>
    %34 = arith.subf %33, %32 : vector<16x128xf32>
    %35 = math.exp %34 : vector<16x128xf32>
    %cst_16 = arith.constant 1.000000e+00 : f32
    %36 = vector.broadcast %cst_16 : f32 to vector<16x128xf32>
    %37 = arith.addf %36, %35 : vector<16x128xf32>
    %38 = tpu.reciprocal %37 {approx = true} : vector<16x128xf32> -> vector<16x128xf32>
    %39 = arith.mulf %32, %38 : vector<16x128xf32>
    %40 = arith.truncf %39 : vector<16x128xf32> to vector<16x128xbf16>
    %c0_17 = arith.constant 0 : index
    %c0_18 = arith.constant 0 : index
    %41 = vector.load %arg5[%c0_17, %c0_18] : memref<128x128xbf16, #tpu.memory_space<vmem>>, vector<128x128xbf16>
    %cst_19 = arith.constant dense<0.000000e+00> : vector<16x128xf32>
    %42 = tpu.matmul %40, %41, %cst_19 {dimension_numbers = #tpu.dot_dimension_numbers<[1], [0], [0], [1], [0, 0, 1, 1], [], []>} : vector<16x128xbf16>, vector<128x128xbf16>, vector<16x128xf32> -> vector<16x128xf32>
    %43 = vector.extract_strided_slice %0 {offsets = [3, 0], sizes = [1, 128], strides = [1, 1]} : vector<8x128xf32> to vector<1x128xf32>
    %44 = vector.broadcast %43 : vector<1x128xf32> to vector<16x128xf32>
    %45 = arith.addf %42, %44 : vector<16x128xf32>
    %c0_20 = arith.constant 0 : index
    %c0_21 = arith.constant 0 : index
    %46 = vector.load %arg7[%c0_20, %c0_21] : memref<16x128xf32, #tpu.memory_space<vmem>>, vector<16x128xf32>
    %47 = arith.addf %45, %46 : vector<16x128xf32>
    %48 = tpu.transpose %47, [1, 0] : vector<16x128xf32> -> vector<128x16xf32>
    %49 = vector.extract_strided_slice %48 {offsets = [0, 0], sizes = [64, 16], strides = [1, 1]} : vector<128x16xf32> to vector<64x16xf32>
    %50 = vector.shape_cast %49 : vector<64x16xf32> to vector<8x8x16xf32>
    %51 = vector.extract_strided_slice %48 {offsets = [64, 0], sizes = [64, 16], strides = [1, 1]} : vector<128x16xf32> to vector<64x16xf32>
    %52 = vector.shape_cast %51 : vector<64x16xf32> to vector<8x8x16xf32>
    %cst_22 = arith.constant dense<0xFF800000> : vector<8x16xf32>
    %53 = vector.multi_reduction <maximumf>, %50, %cst_22 [1] : vector<8x8x16xf32> to vector<8x16xf32>
    %54 = vector.shape_cast %53 : vector<8x16xf32> to vector<8x1x16xf32>
    %55 = vector.broadcast %54 : vector<8x1x16xf32> to vector<8x8x16xf32>
    %56 = arith.subf %50, %55 : vector<8x8x16xf32>
    %57 = math.exp %56 : vector<8x8x16xf32>
    %cst_23 = arith.constant dense<0.000000e+00> : vector<8x16xf32>
    %58 = vector.multi_reduction <add>, %57, %cst_23 [1] : vector<8x8x16xf32> to vector<8x16xf32>
    %59 = vector.shape_cast %58 : vector<8x16xf32> to vector<8x1x16xf32>
    %cst_24 = arith.constant dense<0xFF800000> : vector<8x16xf32>
    %60 = vector.multi_reduction <maximumf>, %52, %cst_24 [1] : vector<8x8x16xf32> to vector<8x16xf32>
    %61 = vector.shape_cast %60 : vector<8x16xf32> to vector<8x1x16xf32>
    %62 = tpu.iota {dimensions = array<i32: 1>} : vector<8x8x16xi32>
    %63 = vector.broadcast %61 : vector<8x1x16xf32> to vector<8x8x16xf32>
    %64 = arith.cmpf oge, %52, %63 : vector<8x8x16xf32>
    %c8_i32 = arith.constant 8 : i32
    %65 = vector.broadcast %c8_i32 : i32 to vector<8x8x16xi32>
    %66 = arith.select %64, %62, %65 : vector<8x8x16xi1>, vector<8x8x16xi32>
    %cst_25 = arith.constant dense<2147483647> : vector<8x16xi32>
    %67 = vector.multi_reduction <minsi>, %66, %cst_25 [1] : vector<8x8x16xi32> to vector<8x16xi32>
    %68 = vector.shape_cast %67 : vector<8x16xi32> to vector<8x1x16xi32>
    %69 = vector.broadcast %68 : vector<8x1x16xi32> to vector<8x8x16xi32>
    %70 = arith.cmpi eq, %62, %69 : vector<8x8x16xi32>
    %cst_26 = arith.constant 0.000000e+00 : f32
    %71 = vector.broadcast %cst_26 : f32 to vector<8x8x16xf32>
    %72 = arith.select %70, %57, %71 : vector<8x8x16xi1>, vector<8x8x16xf32>
    %cst_27 = arith.constant dense<0.000000e+00> : vector<8x16xf32>
    %73 = vector.multi_reduction <add>, %72, %cst_27 [1] : vector<8x8x16xf32> to vector<8x16xf32>
    %74 = vector.shape_cast %59 : vector<8x1x16xf32> to vector<8x16xf32>
    %75 = tpu.reciprocal %74 {approx = true} : vector<8x16xf32> -> vector<8x16xf32>
    %76 = arith.mulf %73, %75 : vector<8x16xf32>
    %c0_28 = arith.constant 0 : index
    %c0_29 = arith.constant 0 : index
    %77 = vector.load %arg8[%c0_28, %c0_29] : memref<8x16xi32, #tpu.memory_space<vmem>>, vector<8x16xi32>
    tpu.vector_store %arg8[%c0_28, %c0_29], %67 {strides = array<i32>} : memref<8x16xi32, #tpu.memory_space<vmem>>, vector<8x16xi32>,
    %c0_30 = arith.constant 0 : index
    %c0_31 = arith.constant 0 : index
    %78 = vector.load %arg9[%c0_30, %c0_31] : memref<8x16xf32, #tpu.memory_space<vmem>>, vector<8x16xf32>
    tpu.vector_store %arg9[%c0_30, %c0_31], %76 {strides = array<i32>} : memref<8x16xf32, #tpu.memory_space<vmem>>, vector<8x16xf32>,
    return
  }
  func.func @transform_0(%arg0: i32) -> (i32, i32) {
    %c0_i32 = arith.constant 0 : i32
    %c0_i32_0 = arith.constant 0 : i32
    return %arg0, %c0_i32 : i32, i32
  }
  func.func @transform_1(%arg0: i32) -> (i32, i32) {
    %c0_i32 = arith.constant 0 : i32
    %c0_i32_0 = arith.constant 0 : i32
    %c0_i32_1 = arith.constant 0 : i32
    return %c0_i32, %c0_i32_0 : i32, i32
  }
  func.func @transform_2(%arg0: i32) -> (i32, i32) {
    %c0_i32 = arith.constant 0 : i32
    %c0_i32_0 = arith.constant 0 : i32
    %c0_i32_1 = arith.constant 0 : i32
    return %c0_i32, %c0_i32_0 : i32, i32
  }
  func.func @transform_3(%arg0: i32) -> (i32, i32) {
    %c0_i32 = arith.constant 0 : i32
    %c0_i32_0 = arith.constant 0 : i32
    %c0_i32_1 = arith.constant 0 : i32
    return %c0_i32, %c0_i32_0 : i32, i32
  }
  func.func @transform_4(%arg0: i32) -> (i32, i32) {
    %c0_i32 = arith.constant 0 : i32
    %c0_i32_0 = arith.constant 0 : i32
    %c0_i32_1 = arith.constant 0 : i32
    return %c0_i32, %c0_i32_0 : i32, i32
  }
  func.func @transform_5(%arg0: i32) -> (i32, i32) {
    %c0_i32 = arith.constant 0 : i32
    %c0_i32_0 = arith.constant 0 : i32
    %c0_i32_1 = arith.constant 0 : i32
    return %c0_i32, %c0_i32_0 : i32, i32
  }
  func.func @transform_6(%arg0: i32) -> (i32, i32) {
    %c0_i32 = arith.constant 0 : i32
    %c0_i32_0 = arith.constant 0 : i32
    return %arg0, %c0_i32 : i32, i32
  }
  func.func @transform_7(%arg0: i32) -> (i32, i32) {
    %c0_i32 = arith.constant 0 : i32
    %c0_i32_0 = arith.constant 0 : i32
    return %c0_i32, %arg0 : i32, i32
  }
  func.func @transform_8(%arg0: i32) -> (i32, i32) {
    %c0_i32 = arith.constant 0 : i32
    %c0_i32_0 = arith.constant 0 : i32
    return %c0_i32, %arg0 : i32, i32
  }
}

</mosaic_0001>

<bundles_post_ra>
// kernel: tpu_custom_call.1
= control target key start
LH: loop header
LB: loop body
LE: loop exit
PB: predicated region body
PF: predicated region fallthrough
CT: control target
= control target key end

     0   :  { %14 = vsyncpa [#allocation3], 0  ;;  %s1997_s0 = inlined_call_operand.hbm [shape: bf16[16,384], index: 0, kind: input, shape index: {}]   ;;  %s1998_s1 = inlined_call_operand.hbm [shape: bf16[384,128], index: 1, kind: input, shape index: {}]   ;;  %s1999_s2 = inlined_call_operand.hbm [shape: bf16[128,128], index: 2, kind: input, shape index: {}]   ;;  %s2000_s3 = inlined_call_operand.hbm [shape: bf16[128,128], index: 3, kind: input, shape index: {}]   ;;  %s2001_s4 = inlined_call_operand.hbm [shape: bf16[128,128], index: 4, kind: input, shape index: {}]   ;;  %s2002_s5 = inlined_call_operand.hbm [shape: f32[8,128], index: 5, kind: input, shape index: {}]   ;;  %s2003_s6 = inlined_call_operand.hbm [shape: f32[16,128], index: 6, kind: input, shape index: {}]   ;;  %s2004_s7 = inlined_call_operand.hbm [shape: s32[8,16], index: 7, kind: output, shape index: {0}]   ;;  %s2005_s8 = inlined_call_operand.hbm [shape: f32[8,16], index: 8, kind: output, shape index: {1}]  }
   0x1   :  { %15 = vsyncpa [#allocation6], 0 }
   0x2   :  { %16 = vsyncpa [#allocation9], 0 }
   0x3   :  { %17 = vsyncpa [#allocation12], 0 }
   0x4   :  { %18 = vsyncpa [#allocation4], 0  ;;  %s37_s29 = sshll.u32 %s1998_s1, 4  ;;  %s38_s29 = int_to_ptr.hbm [resolvable:$true] %s37_s29 }
   0x5   :  { %19 = vsyncpa [#allocation16], 0  ;;  %s1707_s30 = smov [#allocation5]   ;;  %s63_s12 = sshll.u32 %s2000_s3, 4  ;;  %s64_s12 = int_to_ptr.hbm [resolvable:$true] %s63_s12 }
   0x6   :  { %s39_s9 = sshll.u32 %s1707_s30, 4  ;;  %s1708_s13 = smov 64   ;;  %s40_s9 = int_to_ptr.vmem [resolvable:$true] %s39_s9 }
   0x7   :  { %s1709_s14 = smov 4   ;;  %s1710_s15 = smov [#allocation8]  }
   0x8   :  { %45 = dma.hbm_to_vmem [thread:$0]  %s38_s29, 3072, %s40_s9, [#allocation6], %s1708_s13, %s1708_s13, %s1709_s14  }
   0x9   :  { %s65_s16 = sshll.u32 %s1710_s15, 4  ;;  %s90_s18 = sshll.u32 %s2002_s5, 4  ;;  %s66_s16 = int_to_ptr.vmem [resolvable:$true] %s65_s16  ;;  %s91_s18 = int_to_ptr.hbm [resolvable:$true] %s90_s18 }
   0xa   :  { %71 = dma.hbm_to_vmem [thread:$0]  %s64_s12, 1024, %s66_s16, [#allocation9], %s1708_s13, %s1708_s13, %s1709_s14  }
   0xb   :  { %s24_s20 = sshll.u32 %s1997_s0, 4  ;;  %s1711_s21 = smov [#allocation11]   ;;  %s25_s20 = int_to_ptr.hbm [resolvable:$true] %s24_s20 }
   0xc   :  { %s92_s22 = sshll.u32 %s1711_s21, 4  ;;  %s1712_s23 = smov [#allocation2]   ;;  %s93_s22 = int_to_ptr.vmem [resolvable:$true] %s92_s22 }
   0xd   :  { %95 = dma.hbm_to_vmem [thread:$0]  %s91_s18, 128, %s93_s22, [#allocation12]  }
   0xe   :  { %s26_s24 = sshll.u32 %s1712_s23, 4  ;;  %s1713_s25 = smov 192   ;;  %s27_s24 = int_to_ptr.vmem [resolvable:$true] %s26_s24 }
   0xf   :  { %s1714_s5 = smov 12   ;;  %s50_s28 = sshll.u32 %s1999_s2, 4  ;;  %s51_s28 = int_to_ptr.hbm [resolvable:$true] %s50_s28 }
  0x10   :  { %32 = dma.hbm_to_vmem [thread:$0]  %s25_s20, 384, %s27_s24, [#allocation3], %s1713_s25, %s1713_s25, %s1714_s5  }
  0x11   :  { %s1715_s29 = smov [#allocation7]   ;;  %s76_s10 = sshll.u32 %s2001_s4, 4  ;;  %s77_s10 = int_to_ptr.hbm [resolvable:$true] %s76_s10 }
  0x12   :  { %s52_s30 = sshll.u32 %s1715_s29, 4  ;;  %s1716_s11 = smov [#allocation10]   ;;  %s53_s30 = int_to_ptr.vmem [resolvable:$true] %s52_s30 }
  0x13   :  { %58 = dma.hbm_to_vmem [thread:$0]  %s51_s28, 1024, %s53_s30, [#allocation6], %s1708_s13, %s1708_s13, %s1709_s14  }
  0x14   :  { %s78_s12 = sshll.u32 %s1716_s11, 4  ;;  %s100_s17 = sshll.u32 %s2003_s6, 4  ;;  %s79_s12 = int_to_ptr.vmem [resolvable:$true] %s78_s12  ;;  %s101_s17 = int_to_ptr.hbm [resolvable:$true] %s100_s17 }
  0x15   :  { %84 = dma.hbm_to_vmem [thread:$0]  %s77_s10, 1024, %s79_s12, [#allocation9], %s1708_s13, %s1708_s13, %s1709_s14  }
  0x16   :  { %s1717_s2 = smov [#allocation13]   ;;  %s1718_s4 = smov 128  }
  0x17   :  { %s102_s1 = sshll.u32 %s1717_s2, 4  ;;  %s1719_s18 = smov 8   ;;  %s103_s1 = int_to_ptr.vmem [resolvable:$true] %s102_s1 }
  0x18   :  { %108 = dma.hbm_to_vmem [thread:$0]  %s101_s17, 256, %s103_s1, [#allocation12], %s1718_s4, %s1718_s4, %s1719_s18  }
  0x19   :  { %1695 = dma.done.wait [#allocation3], 384  }
  0x1a   :  { %1696 = vsyncadd [#allocation3], 4294966912 }
  0x1b   :  { %1697 = dma.done.wait [#allocation6], 4096  }
  0x1c   :  { %1698 = vsyncadd [#allocation6], 4294963200 }
  0x1d   :  { %1699 = dma.done.wait [#allocation9], 2048  }
  0x1e   :  { %1700 = vsyncadd [#allocation9], 4294965248 }
  0x1f   :  { %1701 = dma.done.wait [#allocation12], 384  }
  0x20   :  { %1702 = vsyncadd [#allocation12], 4294966912  ;;  %v1366_v0 = vld [vmem:[#allocation5 + $0x38] sm:$0xff]  ;;  %v1365_v3 = vld [vmem:[#allocation5 + $0x30] sm:$0xff]  ;;  %vm705_vm0 = vcmask 130048   ;;  %s1720_s6 = smov [#allocation14]  }
  0x21   :  { %v1374_v1 = vld [vmem:[#allocation5 + $0x78] sm:$0xff]  ;;  %351 = vmatpush.bf16.msra.mxu0 %v1366_v0  ;;  %v1373_v4 = vld [vmem:[#allocation5 + $0x70] sm:$0xff]  ;;  %v1364_v6 = vld [vmem:[#allocation5 + $0x28] sm:$0xff]  ;;  %s1121_s13 = sshll.u32 %s1720_s6, 4  ;;  %s1123_s19 = sshll.u32 %s2004_s7, 4  ;;  %s1122_s13 = int_to_ptr.vmem [resolvable:$true] %s1121_s13  ;;  %s1124_s19 = int_to_ptr.hbm [resolvable:$true] %s1123_s19 }
  0x22   :  { %v1382_v2 = vld [vmem:[#allocation5 + $0xb8] sm:$0xff]  ;;  %365 = vmatpush.bf16.msra.mxu1 %v1374_v1  ;;  %v1381_v5 = vld [vmem:[#allocation5 + $0xb0] sm:$0xff]  ;;  %v1372_v7 = vld [vmem:[#allocation5 + $0x68] sm:$0xff]  ;;  %s1721_s7 = smov [#allocation15]   ;;  %s1134_s23 = sshll.u32 %s2005_s8, 4  ;;  %s1135_s23 = int_to_ptr.hbm [resolvable:$true] %s1134_s23 }
  0x23   :  { %379 = vmatpush.bf16.msra.mxu2 %v1382_v2  ;;  %v1380_v8 = vld [vmem:[#allocation5 + $0xa8] sm:$0xff]  ;;  %v1363_v9 = vld [vmem:[#allocation5 + $0x20] sm:$0xff]  ;;  %v1362_v12 = vld [vmem:[#allocation5 + $0x18] sm:$0xff]  ;;  %s1132_s20 = sshll.u32 %s1721_s7, 4  ;;  %s1133_s20 = int_to_ptr.vmem [resolvable:$true] %s1132_s20 }
  0x24   :  { %v1371_v10 = vld [vmem:[#allocation5 + $0x60] sm:$0xff]  ;;  %v1370_v13 = vld [vmem:[#allocation5 + $0x58] sm:$0xff]  ;;  %v1361_v15 = vld [vmem:[#allocation5 + $0x10] sm:$0xff] }
  0x25   :  { %352 = vmatpush.bf16.msra.mxu0 %v1365_v3  ;;  %v1379_v11 = vld [vmem:[#allocation5 + $0xa0] sm:$0xff]  ;;  %v1378_v14 = vld [vmem:[#allocation5 + $0x98] sm:$0xff]  ;;  %v1369_v16 = vld [vmem:[#allocation5 + $0x50] sm:$0xff] }
  0x26   :  { %366 = vmatpush.bf16.msra.mxu1 %v1373_v4  ;;  %v1377_v17 = vld [vmem:[#allocation5 + $0x90] sm:$0xff]  ;;  %v1360_v18 = vld [vmem:[#allocation5 + $0x8] sm:$0xff]  ;;  %v1359_v21 = vld [vmem:[#allocation5] sm:$0xff] }
  0x27   :  { %380 = vmatpush.bf16.msra.mxu2 %v1381_v5  ;;  %v1368_v19 = vld [vmem:[#allocation5 + $0x48] sm:$0xff]  ;;  %v1367_v22 = vld [vmem:[#allocation5 + $0x40] sm:$0xff]  ;;  %v1357_v24 = vld [vmem:[#allocation2 + $0x8] sm:$0xf0] }
  0x28   :  { %v1376_v20 = vld [vmem:[#allocation5 + $0x88] sm:$0xff]  ;;  %v1156_v26 = vld [vmem:[#allocation2 + $0xc] sm:$0xf0]  ;;  %v1375_v27 = vld [vmem:[#allocation5 + $0x80] sm:$0xff] }
  0x29   :  { %353 = vmatpush.bf16.msra.mxu0 %v1364_v6  ;;  %v1154_v23 = vld [vmem:[#allocation2] sm:$0xf]  ;;  %v1356_v25 = vld [vmem:[#allocation2 + $0x4] sm:$0xf]  ;;  %v1162_v28 = vld [vmem:[#allocation2 + $0x8] sm:$0xf] }
  0x2a   :  { %367 = vmatpush.bf16.msra.mxu1 %v1372_v7  ;;  %v1358_v29 = vld [vmem:[#allocation2 + $0x10] sm:$0xf0]  ;;  %v1155_v30 = vor.u32 %v1357_v24, %v1154_v23  ;;  %v1159_v31 = vor.u32 %v1356_v25, %v1156_v26  ;;  %v1389_v34 = vld [vmem:[#allocation7 + $0x30] sm:$0xff]  ;;  %v1388_v35 = vld [vmem:[#allocation7 + $0x28] sm:$0xff] }
  0x2b   :  { %381 = vmatpush.bf16.msra.mxu2 %v1380_v8  ;;  %v1163_v32 = vor.u32 %v1358_v29, %v1162_v28  ;;  %v1390_v33 = vld [vmem:[#allocation7 + $0x38] sm:$0xff]  ;;  %v1387_v36 = vld [vmem:[#allocation7 + $0x20] sm:$0xff]  ;;  %v1385_v40 = vld [vmem:[#allocation7 + $0x10] sm:$0xff] }
  0x2c   :  { %471 = vmatpush.bf16.msra.mxu3 %v1390_v33  ;;  %v1386_v37 = vld [vmem:[#allocation7 + $0x18] sm:$0xff]  ;;  %v1800_v38 = vld [vmem:[#allocation11] sm:$0xff]  ;;  %v1384_v43 = vld [vmem:[#allocation7 + $0x8] sm:$0xff] }
  0x2d   :  { %354 = vmatpush.bf16.msra.mxu0 %v1363_v9  ;;  %v190_v39 = vperm.slane %v1800_v38, 0  ;;  %v1383_v46 = vld [vmem:[#allocation7] sm:$0xff]  ;;  %v1398_v4 = vld [vmem:[#allocation8 + $0x38] sm:$0xff]  ;;  %v1397_v5 = vld [vmem:[#allocation8 + $0x30] sm:$0xff] }
  0x2e   :  { %368 = vmatpush.bf16.msra.mxu1 %v1371_v10  ;;  %v1396_v6 = vld [vmem:[#allocation8 + $0x28] sm:$0xff]  ;;  %v1395_v7 = vld [vmem:[#allocation8 + $0x20] sm:$0xff]  ;;  %v1394_v8 = vld [vmem:[#allocation8 + $0x18] sm:$0xff] }
  0x2f   :  { %382 = vmatpush.bf16.msra.mxu2 %v1379_v11  ;;  %v1393_v9 = vld [vmem:[#allocation8 + $0x10] sm:$0xff]  ;;  %v1392_v10 = vld [vmem:[#allocation8 + $0x8] sm:$0xff]  ;;  %v422_v11 = vperm.slane %v1800_v38, 1  ;;  %v1403_v33 = vld [vmem:[#allocation10 + $0x20] sm:$0xff] }
  0x30   :  { %472 = vmatpush.bf16.msra.mxu3 %v1389_v34  ;;  %v1402_v34 = vld [vmem:[#allocation10 + $0x18] sm:$0xff] }
  0x31   :  { %355 = vmatpush.bf16.msra.mxu0 %v1362_v12  ;;  %v1391_v12 = vld [vmem:[#allocation8] sm:$0xff] }
  0x32   :  { %369 = vmatpush.bf16.msra.mxu1 %v1370_v13 }
  0x33   :  { %383 = vmatpush.bf16.msra.mxu2 %v1378_v14 }
  0x34   :  { %473 = vmatpush.bf16.msra.mxu3 %v1388_v35  ;;  %v1401_v35 = vld [vmem:[#allocation10 + $0x10] sm:$0xff] }
  0x35   :  { %356 = vmatpush.bf16.msra.mxu0 %v1361_v15 }
  0x36   :  { %370 = vmatpush.bf16.msra.mxu1 %v1369_v16 }
  0x37   :  { %384 = vmatpush.bf16.msra.mxu2 %v1377_v17 }
  0x38   :  { %474 = vmatpush.bf16.msra.mxu3 %v1387_v36  ;;  %v1400_v36 = vld [vmem:[#allocation10 + $0x8] sm:$0xff] }
  0x39   :  { %357 = vmatpush.bf16.msra.mxu0 %v1360_v18 }
  0x3a   :  { %371 = vmatpush.bf16.msra.mxu1 %v1368_v19 }
  0x3b   :  { %385 = vmatpush.bf16.msra.mxu2 %v1376_v20 }
  0x3c   :  { %475 = vmatpush.bf16.msra.mxu3 %v1386_v37  ;;  %v514_v37 = vperm.slane %v1800_v38, 2 }
  0x3d   :  { %358 = vmatpush.bf16.msra.mxu0 %v1359_v21 }
  0x3e   :  { %372 = vmatpush.bf16.msra.mxu1 %v1367_v22 }
  0x3f   :  { %386 = vmatpush.bf16.msra.mxu2 %v1375_v27 }
  0x40   :  { %359 = vmatmul.bf16.vlgmr.msra.gmra.mxu0 %v1155_v30  ;;  %476 = vmatpush.bf16.msra.mxu3 %v1385_v40  ;;  %v1406_v30 = vld [vmem:[#allocation10 + $0x38] sm:$0xff] }
  0x41   :  { %373 = vmatmul.bf16.vlgmr.msra.gmra.mxu1 %v1159_v31  ;;  %563 = vmatpush.bf16.msrb.mxu0 %v1398_v4  ;;  %v1405_v31 = vld [vmem:[#allocation10 + $0x30] sm:$0xff] }
  0x42   :  { %387 = vmatmul.bf16.vlgmr.msra.gmra.mxu2 %v1163_v32  ;;  %655 = vmatpush.bf16.msrb.mxu1 %v1406_v30  ;;  %v1404_v32 = vld [vmem:[#allocation10 + $0x28] sm:$0xff] }
  0x44   :  { %477 = vmatpush.bf16.msra.mxu3 %v1384_v43 }
  0x45   :  { %564 = vmatpush.bf16.msrb.mxu0 %v1397_v5 }
  0x46   :  { %656 = vmatpush.bf16.msrb.mxu1 %v1405_v31 }
  0x48   :  { %478 = vmatpush.bf16.msra.mxu3 %v1383_v46 }
  0x49   :  { %565 = vmatpush.bf16.msrb.mxu0 %v1396_v6 }
  0x4a   :  { %657 = vmatpush.bf16.msrb.mxu1 %v1404_v32 }
  0x4d   :  { %566 = vmatpush.bf16.msrb.mxu0 %v1395_v7 }
  0x4e   :  { %658 = vmatpush.bf16.msrb.mxu1 %v1403_v33 }
  0x51   :  { %567 = vmatpush.bf16.msrb.mxu0 %v1394_v8 }
  0x52   :  { %659 = vmatpush.bf16.msrb.mxu1 %v1402_v34 }
  0x55   :  { %568 = vmatpush.bf16.msrb.mxu0 %v1393_v9 }
  0x56   :  { %660 = vmatpush.bf16.msrb.mxu1 %v1401_v35 }
  0x59   :  { %569 = vmatpush.bf16.msrb.mxu0 %v1392_v10 }
  0x5a   :  { %661 = vmatpush.bf16.msrb.mxu1 %v1400_v36 }
  0x5d   :  { %570 = vmatpush.bf16.msrb.mxu0 %v1391_v12 }
  0xbd   :  { %v360_v41 = vpop.f32.mrf.mxu0 }
  0xbe   :  { %v361_v42 = vadd.f32 %v360_v41, %v190_v39  ;;  %v374_v44 = vpop.f32.mrf.mxu1 }
  0xc0   :  { %v375_v45 = vadd.f32 %v374_v44, %v361_v42 }
  0xc5   :  { %v388_v47 = vpop.f32.mrf.mxu2  ;;  %v362_v49 = vpop.f32.mrf.mxu0 }
  0xc6   :  { %v389_v48 = vadd.f32 %v388_v47, %v375_v45  ;;  %v363_v51 = vadd.f32 %v362_v49, %v190_v39  ;;  %v376_v53 = vpop.f32.mrf.mxu1  ;;  %v1399_v39 = vld [vmem:[#allocation10] sm:$0xff] }
  0xc7   :  { %662 = vmatpush.bf16.msrb.mxu1 %v1399_v39 }
  0xc8   :  { %v393_v50 = vsub.f32 0.0, %v389_v48  ;;  %v377_v54 = vadd.f32 %v376_v53, %v363_v51 }
  0xca   :  { %v395_v52 = vmul.f32 1.442695, %v393_v50 }
  0xcc   :  { %1423 = vpow2.f32 %v395_v52 }
  0xcd   :  { %v390_v55 = vpop.f32.mrf.mxu2 }
  0xce   :  { %v391_v56 = vadd.f32 %v390_v55, %v377_v54 }
  0xd0   :  { %v394_v57 = vsub.f32 0.0, %v391_v56 }
  0xd2   :  { %v397_v58 = vmul.f32 1.442695, %v394_v57  ;;  %v1424_v59 = vpop.eup %1423  ;;  %v606_v57 = vperm.slane %v1800_v38, 3 }
  0xd3   :  { %v399_v60 = vadd.f32 1.0, %v1424_v59  ;;  %v669_v59 = vld [vmem:[#allocation13] sm:$0xff] }
  0xd4   :  { %1425 = vpow2.f32 %v397_v58 }
  0xd5   :  { %1427 = vrcp.f32 %v399_v60 }
  0xda   :  { %v1426_v61 = vpop.eup %1425 }
  0xdb   :  { %v400_v62 = vadd.f32 1.0, %v1426_v61  ;;  %v1428_v63 = vpop.eup %1427 }
  0xdc   :  { %v403_v1 = vmul.f32 %v1428_v63, %v389_v48  ;;  %v670_v63 = vld [vmem:[#allocation13 + $0x8] sm:$0xff] }
  0xdd   :  { %1429 = vrcp.f32 %v400_v62 }
  0xe3   :  { %v1430_v0 = vpop.eup %1429 }
  0xe4   :  { %v404_v2 = vmul.f32 %v1430_v0, %v391_v56 }
  0xe6   :  { %v405_v3 = vpack.c.bf16 %v404_v2, %v403_v1 }
  0xe8   :  { %479 = vmatmul.bf16.vlgmr.msra.gmra.mxu3 %v405_v3 }
 0x16b   :  { %v480_v13 = vpop.f32.mrf.mxu3 }
 0x16c   :  { %v481_v14 = vadd.f32 %v480_v13, %v422_v11 }
 0x16e   :  { %v485_v15 = vsub.f32 0.0, %v481_v14 }
 0x170   :  { %v487_v16 = vmul.f32 1.442695, %v485_v15 }
 0x172   :  { %1431 = vpow2.f32 %v487_v16 }
 0x173   :  { %v482_v17 = vpop.f32.mrf.mxu3 }
 0x174   :  { %v483_v18 = vadd.f32 %v482_v17, %v422_v11 }
 0x176   :  { %v486_v19 = vsub.f32 0.0, %v483_v18 }
 0x178   :  { %v489_v20 = vmul.f32 1.442695, %v486_v19  ;;  %v1432_v21 = vpop.eup %1431 }
 0x179   :  { %v491_v22 = vadd.f32 1.0, %v1432_v21 }
 0x17a   :  { %1433 = vpow2.f32 %v489_v20 }
 0x17b   :  { %1435 = vrcp.f32 %v491_v22 }
 0x180   :  { %v1434_v23 = vpop.eup %1433 }
 0x181   :  { %v492_v24 = vadd.f32 1.0, %v1434_v23  ;;  %v1436_v25 = vpop.eup %1435 }
 0x182   :  { %v495_v27 = vmul.f32 %v1436_v25, %v481_v14 }
 0x183   :  { %1437 = vrcp.f32 %v492_v24 }
 0x189   :  { %v1438_v26 = vpop.eup %1437 }
 0x18a   :  { %v496_v28 = vmul.f32 %v1438_v26, %v483_v18 }
 0x18c   :  { %v497_v29 = vpack.c.bf16 %v496_v28, %v495_v27 }
 0x18e   :  { %571 = vmatmul.bf16.vlgmr.msrb.gmra.mxu0 %v497_v29 }
 0x20b   :  { %v572_v40 = vpop.f32.mrf.mxu0 }
 0x20c   :  { %v573_v41 = vadd.f32 %v572_v40, %v514_v37 }
 0x20e   :  { %v577_v42 = vsub.f32 0.0, %v573_v41 }
 0x210   :  { %v579_v43 = vmul.f32 1.442695, %v577_v42 }
 0x212   :  { %1439 = vpow2.f32 %v579_v43 }
 0x213   :  { %v574_v44 = vpop.f32.mrf.mxu0 }
 0x214   :  { %v575_v45 = vadd.f32 %v574_v44, %v514_v37 }
 0x216   :  { %v578_v46 = vsub.f32 0.0, %v575_v45 }
 0x218   :  { %v581_v47 = vmul.f32 1.442695, %v578_v46  ;;  %v1440_v48 = vpop.eup %1439 }
 0x219   :  { %v583_v49 = vadd.f32 1.0, %v1440_v48 }
 0x21a   :  { %1441 = vpow2.f32 %v581_v47 }
 0x21b   :  { %1443 = vrcp.f32 %v583_v49 }
 0x220   :  { %v1442_v50 = vpop.eup %1441 }
 0x221   :  { %v584_v51 = vadd.f32 1.0, %v1442_v50  ;;  %v1444_v52 = vpop.eup %1443 }
 0x222   :  { %v587_v54 = vmul.f32 %v1444_v52, %v573_v41 }
 0x223   :  { %1445 = vrcp.f32 %v584_v51 }
 0x229   :  { %v1446_v53 = vpop.eup %1445 }
 0x22a   :  { %v588_v55 = vmul.f32 %v1446_v53, %v575_v45 }
 0x22c   :  { %v589_v56 = vpack.c.bf16 %v588_v55, %v587_v54 }
 0x22e   :  { %663 = vmatmul.bf16.vlgmr.msrb.gmra.mxu1 %v589_v56 }
 0x2ab   :  { %v664_v58 = vpop.f32.mrf.mxu1 }
 0x2ac   :  { %v665_v60 = vadd.f32 %v664_v58, %v606_v57 }
 0x2ae   :  { %v671_v61 = vadd.f32 %v669_v59, %v665_v60 }
 0x2b0   :  { %673 = vxpose.xlu0.b32.start [1/2] (short) %v671_v61, 128 }
 0x2b3   :  { %v666_v62 = vpop.f32.mrf.mxu1 }
 0x2b4   :  { %v667_v0 = vadd.f32 %v666_v62, %v606_v57 }
 0x2b6   :  { %v672_v1 = vadd.f32 %v670_v63, %v667_v0 }
 0x2b8   :  { %674 = vxpose.xlu0.b32.end [2/2] (short) %v672_v1, 128 }
 0x354   :  { %v689_v2 = vpop.trf.xlu0 }
 0x355   :  { %v706_v4 = vsel %vm705_vm0, %v689_v2, -inf }
 0x356   :  { %v707_v5 = vrot.slane %v706_v4, 4 }
 0x358   :  { %v708_v9 = vmax.f32 %v706_v4, %v707_v5 }
 0x35a   :  { %v709_v12 = vrot.slane %v708_v9, 2 }
 0x35c   :  { %v690_v3 = vpop.trf.xlu0  ;;  %v710_v18 = vmax.f32 %v708_v9, %v709_v12 }
 0x35d   :  { %v713_v6 = vsel %vm705_vm0, %v690_v3, -inf }
 0x35e   :  { %v714_v8 = vrot.slane %v713_v6, 4  ;;  %v711_v23 = vrot.slane %v710_v18, 1 }
 0x360   :  { %v715_v11 = vmax.f32 %v713_v6, %v714_v8  ;;  %v712_v28 = vmax.f32 %v710_v18, %v711_v23 }
 0x362   :  { %v716_v17 = vrot.slane %v715_v11, 2  ;;  %v762_v33 = vsub.f32 %v689_v2, %v712_v28 }
 0x364   :  { %v691_v7 = vpop.trf.xlu0  ;;  %v717_v21 = vmax.f32 %v715_v11, %v716_v17  ;;  %v770_v40 = vmul.f32 1.442695, %v762_v33 }
 0x365   :  { %v720_v38 = vsel %vm705_vm0, %v691_v7, -inf }
 0x366   :  { %v721_v10 = vrot.slane %v720_v38, 4  ;;  %v718_v26 = vrot.slane %v717_v21, 1  ;;  %1447 = vpow2.f32 %v770_v40 }
 0x368   :  { %v722_v13 = vmax.f32 %v720_v38, %v721_v10  ;;  %v719_v31 = vmax.f32 %v717_v21, %v718_v26  ;;  %v898_v21 = vlaneseq }
 0x36a   :  { %v723_v19 = vrot.slane %v722_v13, 2  ;;  %v763_v37 = vsub.f32 %v690_v3, %v719_v31  ;;  %v1839_v33 = vshrl.u32 %v898_v21, 7 }
 0x36c   :  { %v692_v14 = vpop.trf.xlu0  ;;  %v724_v24 = vmax.f32 %v722_v13, %v723_v19  ;;  %v772_v43 = vmul.f32 1.442695, %v763_v37  ;;  %v1817_v52 = vpop.eup %1447 }
 0x36d   :  { %v727_v15 = vsel %vm705_vm0, %v692_v14, -inf  ;;  %v786_v55 = vsel %vm705_vm0, %v1817_v52, 0.0 }
 0x36e   :  { %v728_v16 = vrot.slane %v727_v15, 4  ;;  %v725_v29 = vrot.slane %v724_v24, 1  ;;  %1449 = vpow2.f32 %v772_v43  ;;  %v787_v59 = vrot.slane %v786_v55, 4 }
 0x370   :  { %v729_v20 = vmax.f32 %v727_v15, %v728_v16  ;;  %v726_v34 = vmax.f32 %v724_v24, %v725_v29  ;;  %v788_v2 = vadd.f32 %v787_v59, %v786_v55 }
 0x372   :  { %v730_v22 = vrot.slane %v729_v20, 2  ;;  %v764_v41 = vsub.f32 %v691_v7, %v726_v34  ;;  %v789_v12 = vrot.slane %v788_v2, 2 }
 0x374   :  { %v693_v25 = vpop.trf.xlu0  ;;  %v731_v27 = vmax.f32 %v729_v20, %v730_v22  ;;  %v774_v45 = vmul.f32 1.442695, %v764_v41  ;;  %v1821_v54 = vpop.eup %1449  ;;  %v790_v22 = vadd.f32 %v789_v12, %v788_v2 }
 0x375   :  { %v734_v30 = vsel %vm705_vm0, %v693_v25, -inf  ;;  %v793_v60 = vsel %vm705_vm0, %v1821_v54, 0.0 }
 0x376   :  { %v732_v32 = vrot.slane %v731_v27, 1  ;;  %v735_v36 = vrot.slane %v734_v30, 4  ;;  %1451 = vpow2.f32 %v774_v45  ;;  %v794_v1 = vrot.slane %v793_v60, 4 }
 0x377   :  { %v791_v34 = vrot.slane %v790_v22, 1 }
 0x378   :  { %v733_v39 = vmax.f32 %v731_v27, %v732_v32  ;;  %v736_v42 = vmax.f32 %v734_v30, %v735_v36  ;;  %v795_v10 = vadd.f32 %v794_v1, %v793_v60 }
 0x37a   :  { %v765_v44 = vsub.f32 %v692_v14, %v733_v39  ;;  %v737_v47 = vrot.slane %v736_v42, 2  ;;  %v796_v19 = vrot.slane %v795_v10, 2 }
 0x37c   :  { %v1811_v35 = vpop.trf.xlu0  ;;  %v776_v49 = vmul.f32 1.442695, %v765_v44  ;;  %v738_v50 = vmax.f32 %v736_v42, %v737_v47  ;;  %v1825_v58 = vpop.eup %1451  ;;  %v797_v31 = vadd.f32 %v796_v19, %v795_v10 }
 0x37d   :  { %v741_v48 = vsel %vm705_vm0, %v1811_v35, -inf  ;;  %v800_v62 = vsel %vm705_vm0, %v1825_v58, 0.0 }
 0x37e   :  { %v742_v51 = vrot.slane %v741_v48, 4  ;;  %1453 = vpow2.f32 %v776_v49  ;;  %v739_v56 = vrot.slane %v738_v50, 1  ;;  %v801_v3 = vrot.slane %v800_v62, 4 }
 0x37f   :  { %v798_v44 = vrot.slane %v797_v31, 1  ;;  %v792_v49 = vadd.f32 %v791_v34, %v790_v22 }
 0x380   :  { %v743_v57 = vmax.f32 %v741_v48, %v742_v51  ;;  %v740_v63 = vmax.f32 %v738_v50, %v739_v56  ;;  %v802_v15 = vadd.f32 %v801_v3, %v800_v62 }
 0x381   :  { %v799_v2 = vadd.f32 %v798_v44, %v797_v31 }
 0x382   :  { %v744_v0 = vrot.slane %v743_v57, 2  ;;  %v766_v6 = vsub.f32 %v693_v25, %v740_v63  ;;  %v803_v26 = vrot.slane %v802_v15, 2 }
 0x384   :  { %v1813_v46 = vpop.trf.xlu0  ;;  %v1829_v61 = vpop.eup %1453  ;;  %v745_v7 = vmax.f32 %v743_v57, %v744_v0  ;;  %v778_v16 = vmul.f32 1.442695, %v766_v6  ;;  %v804_v40 = vadd.f32 %v803_v26, %v802_v15 }
 0x385   :  { %v807_v4 = vsel %vm705_vm0, %v1829_v61, 0.0  ;;  %v748_v38 = vsel %vm705_vm0, %v1813_v46, -inf }
 0x386   :  { %v808_v11 = vrot.slane %v807_v4, 4  ;;  %v749_v13 = vrot.slane %v748_v38, 4  ;;  %v746_v17 = vrot.slane %v745_v7, 1  ;;  %1455 = vpow2.f32 %v778_v16 }
 0x387   :  { %v805_v57 = vrot.slane %v804_v40, 1  ;;  %1457 = vrcp.f32 %v792_v49 }
 0x388   :  { %v809_v20 = vadd.f32 %v808_v11, %v807_v4  ;;  %v750_v23 = vmax.f32 %v748_v38, %v749_v13  ;;  %v747_v27 = vmax.f32 %v745_v7, %v746_v17 }
 0x389   :  { %v806_v38 = vadd.f32 %v805_v57, %v804_v40 }
 0x38a   :  { %v810_v32 = vrot.slane %v809_v20, 2  ;;  %v751_v36 = vrot.slane %v750_v23, 2  ;;  %v767_v41 = vsub.f32 %v1811_v35, %v747_v27 }
 0x38c   :  { %v1819_v53 = vpop.trf.xlu0  ;;  %v1842_v43 = vpop.eup %1455  ;;  %v811_v45 = vadd.f32 %v810_v32, %v809_v20  ;;  %v752_v50 = vmax.f32 %v750_v23, %v751_v36  ;;  %v780_v35 = vmul.f32 1.442695, %v767_v41 }
 0x38d   :  { %v755_v47 = vsel %vm705_vm0, %v1819_v53, -inf  ;;  %v814_v62 = vsel %vm705_vm0, %v1842_v43, 0.0  ;;  %v1860_v26 = vpop.eup %1457 }
 0x38e   :  { %v756_v63 = vrot.slane %v755_v47, 4  ;;  %v812_v3 = vrot.slane %v811_v45, 1  ;;  %v753_v4 = vrot.slane %v752_v50, 1  ;;  %1459 = vpow2.f32 %v780_v35 }
 0x38f   :  { %1461 = vrcp.f32 %v799_v2 }
 0x390   :  { %v757_v10 = vmax.f32 %v755_v47, %v756_v63  ;;  %v813_v12 = vadd.f32 %v812_v3, %v811_v45  ;;  %1463 = vrcp.f32 %v806_v38 }
 0x392   :  { %v758_v23 = vrot.slane %v757_v10, 2  ;;  %1465 = vrcp.f32 %v813_v12 }
 0x394   :  { %v697_v5 = vpop.trf.xlu0  ;;  %v1862_v27 = vpop.eup %1459 }
 0x395   :  { %v842_v8 = vsel %vm705_vm0, %v697_v5, -inf  ;;  %v1866_v32 = vpop.eup %1461 }
 0x396   :  { %v843_v9 = vrot.slane %v842_v8, 4  ;;  %v1877_v47 = vpop.eup %1463 }
 0x398   :  { %v844_v14 = vmax.f32 %v842_v8, %v843_v9  ;;  %v815_v8 = vrot.slane %v814_v62, 4 }
 0x39a   :  { %v845_v18 = vrot.slane %v844_v14, 2  ;;  %v816_v19 = vadd.f32 %v815_v8, %v814_v62 }
 0x39c   :  { %v846_v24 = vmax.f32 %v844_v14, %v845_v18  ;;  %v698_v25 = vpop.trf.xlu0  ;;  %v754_v14 = vmax.f32 %v752_v50, %v753_v4  ;;  %v817_v34 = vrot.slane %v816_v19, 2 }
 0x39d   :  { %v849_v28 = vsel %vm705_vm0, %v698_v25, -inf }
 0x39e   :  { %v847_v29 = vrot.slane %v846_v24, 1  ;;  %v850_v30 = vrot.slane %v849_v28, 4  ;;  %v768_v36 = vsub.f32 %v1813_v46, %v754_v14 }
 0x3a0   :  { %v848_v37 = vmax.f32 %v846_v24, %v847_v29  ;;  %v851_v39 = vmax.f32 %v849_v28, %v850_v30 }
 0x3a2   :  { %vm900_vm1 = vcmp.ge.f32.partialorder %v697_v5, %v848_v37  ;;  %v852_v42 = vrot.slane %v851_v39, 2 }
 0x3a3   :  { %v908_v48 = vsel %vm900_vm1, %v1839_v33, 8 }
 0x3a4   :  { %v916_v51 = vsel %vm705_vm0, %v908_v48, 2147483647  ;;  %v853_v55 = vmax.f32 %v851_v39, %v852_v42  ;;  %v1848_v56 = vpop.trf.xlu0  ;;  %v759_v39 = vmax.f32 %v757_v10, %v758_v23  ;;  %v821_v42 = vsel %vm705_vm0, %v1862_v27, 0.0 }
 0x3a5   :  { %v917_v59 = vrot.slane %v916_v51, 4  ;;  %v856_v60 = vsel %vm705_vm0, %v1848_v56, -inf }
 0x3a6   :  { %v854_v0 = vrot.slane %v853_v55, 1  ;;  %v857_v1 = vrot.slane %v856_v60, 4 }
 0x3a7   :  { %vm918_vm2 = vcmp.lt.s32.totalorder %v916_v51, %v917_v59 }
 0x3a8   :  { %v919_v5 = vsel %vm918_vm2, %v916_v51, %v917_v59  ;;  %v855_v6 = vmax.f32 %v853_v55, %v854_v0  ;;  %v858_v7 = vmax.f32 %v856_v60, %v857_v1  ;;  %v818_v55 = vadd.f32 %v817_v34, %v816_v19 }
 0x3a9   :  { %v920_v9 = vrot.slane %v919_v5, 2  ;;  %v760_v59 = vrot.slane %v759_v39, 1  ;;  %v822_v0 = vrot.slane %v821_v42, 4  ;;  %v782_v1 = vmul.f32 1.442695, %v768_v36 }
 0x3aa   :  { %vm901_vm3 = vcmp.ge.f32.partialorder %v698_v25, %v855_v6  ;;  %v859_v11 = vrot.slane %v858_v7, 2  ;;  %v819_v6 = vrot.slane %v818_v55, 1  ;;  %vm1084_vm2 = vcmask 1041409  }
 0x3ab   :  { %vm921_vm4 = vcmp.lt.s32.totalorder %v919_v5, %v920_v9  ;;  %v909_v13 = vsel %vm901_vm3, %v1839_v33, 8  ;;  %v761_v8 = vmax.f32 %v759_v39, %v760_v59  ;;  %v1894_v14 = vadd.f32 %v822_v0, %v821_v42 }
 0x3ac   :  { %v922_v15 = vsel %vm921_vm4, %v919_v5, %v920_v9  ;;  %v926_v16 = vsel %vm705_vm0, %v909_v13, 2147483647  ;;  %v860_v17 = vmax.f32 %v858_v7, %v859_v11  ;;  %v1856_v18 = vpop.trf.xlu0  ;;  %1467 = vpow2.f32 %v782_v1 }
 0x3ad   :  { %v923_v20 = vrot.slane %v922_v15, 1  ;;  %v927_v21 = vrot.slane %v926_v16, 4  ;;  %v863_v22 = vsel %vm705_vm0, %v1856_v18, -inf }
 0x3ae   :  { %v861_v24 = vrot.slane %v860_v17, 1  ;;  %v864_v25 = vrot.slane %v863_v22, 4 }
 0x3af   :  { %vm924_vm5 = vcmp.lt.s32.totalorder %v922_v15, %v923_v20  ;;  %vm928_vm6 = vcmp.lt.s32.totalorder %v926_v16, %v927_v21 }
 0x3b0   :  { %v1864_v28 = vsel %vm924_vm5, %v922_v15, %v923_v20  ;;  %v929_v29 = vsel %vm928_vm6, %v926_v16, %v927_v21  ;;  %v862_v30 = vmax.f32 %v860_v17, %v861_v24  ;;  %v865_v31 = vmax.f32 %v863_v22, %v864_v25 }
 0x3b1   :  { %vm996_vm7 = vcmp.eq.s32.totalorder %v1839_v33, %v1864_v28  ;;  %v930_v37 = vrot.slane %v929_v29, 2 }
 0x3b2   :  { %v1004_v40 = vsel %vm996_vm7, %v1817_v52, 0.0  ;;  %vm902_vm8 = vcmp.ge.f32.partialorder %v1848_v56, %v862_v30  ;;  %v866_v41 = vrot.slane %v865_v31, 2  ;;  %v1882_v52 = vpop.eup %1465  ;;  %v820_v30 = vadd.f32 %v819_v6, %v818_v55 }
 0x3b3   :  { %v1012_v44 = vsel %vm705_vm0, %v1004_v40, 0.0  ;;  %vm931_vm9 = vcmp.lt.s32.totalorder %v929_v29, %v930_v37  ;;  %v910_v45 = vsel %vm902_vm8, %v1839_v33, 8 }
 0x3b4   :  { %v1013_v46 = vrot.slane %v1012_v44, 4  ;;  %v932_v48 = vsel %vm931_vm9, %v929_v29, %v930_v37  ;;  %v936_v49 = vsel %vm705_vm0, %v910_v45, 2147483647  ;;  %v867_v50 = vmax.f32 %v865_v31, %v866_v41  ;;  %v1880_v51 = vpop.trf.xlu0 }
 0x3b5   :  { %v933_v56 = vrot.slane %v932_v48, 1  ;;  %v937_v57 = vrot.slane %v936_v49, 4  ;;  %v870_v35 = vsel %vm705_vm0, %v1880_v51, -inf  ;;  %v824_v37 = vrot.slane %v1894_v14, 2 }
 0x3b6   :  { %v1014_v60 = vadd.f32 %v1013_v46, %v1012_v44  ;;  %v868_v62 = vrot.slane %v867_v50, 1  ;;  %v871_v63 = vrot.slane %v870_v35, 4  ;;  %1469 = vrcp.f32 %v820_v30 }
 0x3b7   :  { %vm934_vm10 = vcmp.lt.s32.totalorder %v932_v48, %v933_v56  ;;  %vm938_vm11 = vcmp.lt.s32.totalorder %v936_v49, %v937_v57 }
 0x3b8   :  { %v1015_v2 = vrot.slane %v1014_v60, 2  ;;  %v1886_v3 = vsel %vm934_vm10, %v932_v48, %v933_v56  ;;  %v939_v4 = vsel %vm938_vm11, %v936_v49, %v937_v57  ;;  %v869_v5 = vmax.f32 %v867_v50, %v868_v62  ;;  %v1910_v48 = vpop.eup %1467 }
 0x3b9   :  { %vm997_vm12 = vcmp.eq.s32.totalorder %v1839_v33, %v1886_v3  ;;  %v940_v7 = vrot.slane %v939_v4, 2  ;;  %v872_v38 = vmax.f32 %v870_v35, %v871_v63 }
 0x3ba   :  { %v1016_v9 = vadd.f32 %v1015_v2, %v1014_v60  ;;  %v1005_v10 = vsel %vm997_vm12, %v1821_v54, 0.0  ;;  %vm903_vm13 = vcmp.ge.f32.partialorder %v1856_v18, %v869_v5  ;;  %v769_v18 = vsub.f32 %v1819_v53, %v761_v8 }
 0x3bb   :  { %v1019_v11 = vsel %vm705_vm0, %v1005_v10, 0.0  ;;  %vm941_vm14 = vcmp.lt.s32.totalorder %v939_v4, %v940_v7  ;;  %v911_v12 = vsel %vm903_vm13, %v1839_v33, 8  ;;  %v873_v13 = vrot.slane %v872_v38, 2 }
 0x3bc   :  { %v1020_v15 = vrot.slane %v1019_v11, 4  ;;  %v942_v16 = vsel %vm941_vm14, %v939_v4, %v940_v7  ;;  %v946_v17 = vsel %vm705_vm0, %v911_v12, 2147483647  ;;  %v1897_v19 = vpop.trf.xlu0  ;;  %v1017_v25 = vrot.slane %v1016_v9, 1 }
 0x3bd   :  { %v943_v20 = vrot.slane %v942_v16, 1  ;;  %v947_v21 = vrot.slane %v946_v17, 4  ;;  %v874_v22 = vmax.f32 %v872_v38, %v873_v13  ;;  %v877_v54 = vsel %vm705_vm0, %v1897_v19, -inf }
 0x3be   :  { %v1021_v23 = vadd.f32 %v1020_v15, %v1019_v11  ;;  %v878_v24 = vrot.slane %v877_v54, 4  ;;  %v784_v53 = vmul.f32 1.442695, %v769_v18  ;;  %v1018_v45 = vadd.f32 %v1017_v25, %v1016_v9  ;;  %v1930_v15 = vpop.eup %1469 }
 0x3bf   :  { %vm944_vm15 = vcmp.lt.s32.totalorder %v942_v16, %v943_v20  ;;  %vm948_vm1 = vcmp.lt.s32.totalorder %v946_v17, %v947_v21  ;;  %v875_v29 = vrot.slane %v874_v22, 1  ;;  %v1927_v11 = vadd.f32 %v824_v37, %v1894_v14 }
 0x3c0   :  { %v1022_v31 = vrot.slane %v1021_v23, 2  ;;  %v1902_v34 = vsel %vm944_vm15, %v942_v16, %v943_v20  ;;  %v949_v36 = vsel %vm948_vm1, %v946_v17, %v947_v21  ;;  %v879_v44 = vmax.f32 %v877_v54, %v878_v24 }
 0x3c1   :  { %vm998_vm3 = vcmp.eq.s32.totalorder %v1839_v33, %v1902_v34  ;;  %v950_v39 = vrot.slane %v949_v36, 2  ;;  %v876_v40 = vmax.f32 %v874_v22, %v875_v29  ;;  %v1076_v0 = vmul.f32 %v1860_v26, %v1018_v45 }
 0x3c2   :  { %v1023_v41 = vadd.f32 %v1022_v31, %v1021_v23  ;;  %v1006_v42 = vsel %vm998_vm3, %v1825_v58, 0.0  ;;  %v880_v58 = vrot.slane %v879_v44, 2  ;;  %1471 = vpow2.f32 %v784_v53 }
 0x3c3   :  { %v1026_v46 = vsel %vm705_vm0, %v1006_v42, 0.0  ;;  %vm951_vm4 = vcmp.lt.s32.totalorder %v949_v36, %v950_v39  ;;  %vm904_vm5 = vcmp.ge.f32.partialorder %v1880_v51, %v876_v40  ;;  %v828_v16 = vsel %vm705_vm0, %v1910_v48, 0.0 }
 0x3c4   :  { %v1024_v49 = vrot.slane %v1023_v41, 1  ;;  %v1027_v50 = vrot.slane %v1026_v46, 4  ;;  %v952_v55 = vsel %vm951_vm4, %v949_v36, %v950_v39  ;;  %v912_v56 = vsel %vm904_vm5, %v1839_v33, 8  ;;  %v1913_v57 = vpop.trf.xlu0 }
 0x3c5   :  { %v953_v35 = vrot.slane %v952_v55, 1  ;;  %v956_v59 = vsel %vm705_vm0, %v912_v56, 2147483647  ;;  %v884_v60 = vsel %vm705_vm0, %v1913_v57, -inf  ;;  %v881_v1 = vmax.f32 %v879_v44, %v880_v58 }
 0x3c6   :  { %v1025_v62 = vadd.f32 %v1024_v49, %v1023_v41  ;;  %v1028_v63 = vadd.f32 %v1027_v50, %v1026_v46  ;;  %v957_v51 = vrot.slane %v956_v59, 4  ;;  %v885_v2 = vrot.slane %v884_v60, 4 }
 0x3c7   :  { %vm954_vm6 = vcmp.lt.s32.totalorder %v952_v55, %v953_v35  ;;  %v882_v38 = vrot.slane %v881_v1, 1  ;;  %v829_v29 = vrot.slane %v828_v16, 4  ;;  %vm1086_vm12 = vcmask 1042434  }
 0x3c8   :  { %v1077_v4 = vmul.f32 %v1866_v32, %v1025_v62  ;;  %v1029_v5 = vrot.slane %v1028_v63, 2  ;;  %v1920_v6 = vsel %vm954_vm6, %v952_v55, %v953_v35  ;;  %vm958_vm7 = vcmp.lt.s32.totalorder %v956_v59, %v957_v51  ;;  %v1940_v25 = vpop.eup %1471 }
 0x3c9   :  { %vm999_vm8 = vcmp.eq.s32.totalorder %v1839_v33, %v1920_v6  ;;  %v959_v7 = vsel %vm958_vm7, %v956_v59, %v957_v51  ;;  %v883_v12 = vmax.f32 %v881_v1, %v882_v38  ;;  %v886_v13 = vmax.f32 %v884_v60, %v885_v2 }
 0x3ca   :  { %v1107_v8 = vsel %vm1084_vm2, %v1077_v4, %v1076_v0  ;;  %v1030_v9 = vadd.f32 %v1029_v5, %v1028_v63  ;;  %v1007_v26 = vsel %vm999_vm8, %v1829_v61, 0.0  ;;  %v960_v10 = vrot.slane %v959_v7, 2 }
 0x3cb   :  { %v1033_v32 = vsel %vm705_vm0, %v1007_v26, 0.0  ;;  %vm905_vm10 = vcmp.ge.f32.partialorder %v1897_v19, %v883_v12  ;;  %v887_v61 = vrot.slane %v886_v13, 2  ;;  %v835_v42 = vsel %vm705_vm0, %v1940_v25, 0.0 }
 0x3cc   :  { %v1031_v17 = vrot.slane %v1030_v9, 1  ;;  %v1034_v20 = vrot.slane %v1033_v32, 4  ;;  %vm961_vm9 = vcmp.lt.s32.totalorder %v959_v7, %v960_v10  ;;  %v1934_v21 = vpop.trf.xlu0  ;;  %v913_v24 = vsel %vm905_vm10, %v1839_v33, 8 }
 0x3cd   :  { %v962_v22 = vsel %vm961_vm9, %v959_v7, %v960_v10  ;;  %v891_v14 = vsel %vm705_vm0, %v1934_v21, -inf  ;;  %v966_v30 = vsel %vm705_vm0, %v913_v24, 2147483647  ;;  %v888_v31 = vmax.f32 %v886_v13, %v887_v61 }
 0x3ce   :  { %v1032_v54 = vadd.f32 %v1031_v17, %v1030_v9  ;;  %v1035_v18 = vadd.f32 %v1034_v20, %v1033_v32  ;;  %v963_v23 = vrot.slane %v962_v22, 1  ;;  %v892_v36 = vrot.slane %v891_v14, 4 }
 0x3cf   :  { %v967_v19 = vrot.slane %v966_v30, 4  ;;  %v889_v53 = vrot.slane %v888_v31, 1  ;;  %v830_v59 = vadd.f32 %v829_v29, %v828_v16  ;;  %v836_v62 = vrot.slane %v835_v42, 4 }
 0x3d0   :  { %v1078_v37 = vmul.f32 %v1877_v47, %v1032_v54  ;;  %v1036_v39 = vrot.slane %v1035_v18, 2  ;;  %vm964_vm11 = vcmp.lt.s32.totalorder %v962_v22, %v963_v23  ;;  %v893_v41 = vmax.f32 %v891_v14, %v892_v36 }
 0x3d1   :  { %v1944_v40 = vsel %vm964_vm11, %v962_v22, %v963_v23  ;;  %vm968_vm14 = vcmp.lt.s32.totalorder %v966_v30, %v967_v19  ;;  %v890_v47 = vmax.f32 %v888_v31, %v889_v53  ;;  %v826_v4 = vrot.slane %v1927_v11, 1 }
 0x3d2   :  { %v1037_v44 = vadd.f32 %v1036_v39, %v1035_v18  ;;  %vm1000_vm13 = vcmp.eq.s32.totalorder %v1839_v33, %v1944_v40  ;;  %v969_v46 = vsel %vm968_vm14, %v966_v30, %v967_v19  ;;  %v894_v49 = vrot.slane %v893_v41, 2 }
 0x3d3   :  { %v1008_v45 = vsel %vm1000_vm13, %v1842_v43, 0.0  ;;  %v970_v56 = vrot.slane %v969_v46, 2  ;;  %v1108_v35 = vsel %vm1086_vm12, %v1078_v37, %v1107_v8  ;;  %vm906_vm15 = vcmp.ge.f32.partialorder %v1913_v57, %v890_v47 }
 0x3d4   :  { %v1038_v50 = vrot.slane %v1037_v44, 1  ;;  %v1040_v55 = vsel %vm705_vm0, %v1008_v45, 0.0  ;;  %v895_v60 = vmax.f32 %v893_v41, %v894_v49  ;;  %v914_v51 = vsel %vm906_vm15, %v1839_v33, 8 }
 0x3d5   :  { %v1041_v58 = vrot.slane %v1040_v55, 4  ;;  %vm971_vm1 = vcmp.lt.s32.totalorder %v969_v46, %v970_v56  ;;  %v976_v1 = vsel %vm705_vm0, %v914_v51, 2147483647  ;;  %v831_v8 = vrot.slane %v830_v59, 2 }
 0x3d6   :  { %v1039_v63 = vadd.f32 %v1038_v50, %v1037_v44  ;;  %v972_v0 = vsel %vm971_vm1, %v969_v46, %v970_v56  ;;  %v896_v2 = vrot.slane %v895_v60, 1  ;;  %v977_v7 = vrot.slane %v976_v1, 4 }
 0x3d7   :  { %v1042_v43 = vadd.f32 %v1041_v58, %v1040_v55  ;;  %v973_v5 = vrot.slane %v972_v0, 1  ;;  %vm1088_vm3 = vcmask 1043459   ;;  %v837_v26 = vadd.f32 %v836_v62, %v835_v42 }
 0x3d8   :  { %v1079_v38 = vmul.f32 %v1882_v52, %v1039_v63  ;;  %v897_v9 = vmax.f32 %v895_v60, %v896_v2  ;;  %vm978_vm5 = vcmp.lt.s32.totalorder %v976_v1, %v977_v7  ;;  %v827_v52 = vadd.f32 %v826_v4, %v1927_v11 }
 0x3d9   :  { %v1043_v57 = vrot.slane %v1042_v43, 2  ;;  %vm974_vm4 = vcmp.lt.s32.totalorder %v972_v0, %v973_v5  ;;  %v979_v13 = vsel %vm978_vm5, %v976_v1, %v977_v7  ;;  %v832_v14 = vadd.f32 %v831_v8, %v830_v59 }
 0x3da   :  { %v1109_v10 = vsel %vm1088_vm3, %v1079_v38, %v1108_v35  ;;  %v975_v12 = vsel %vm974_vm4, %v972_v0, %v973_v5  ;;  %vm907_vm6 = vcmp.ge.f32.partialorder %v1934_v21, %v897_v9  ;;  %v980_v16 = vrot.slane %v979_v13, 2 }
 0x3db   :  { %v1044_v32 = vadd.f32 %v1043_v57, %v1042_v43  ;;  %vm1001_vm7 = vcmp.eq.s32.totalorder %v1839_v33, %v975_v12  ;;  %v915_v17 = vsel %vm907_vm6, %v1839_v33, 8  ;;  %v838_v23 = vrot.slane %v837_v26, 2 }
 0x3dc   :  { %v1009_v22 = vsel %vm1001_vm7, %v1862_v27, 0.0  ;;  %v986_v61 = vsel %vm705_vm0, %v915_v17, 2147483647  ;;  %vm981_vm8 = vcmp.lt.s32.totalorder %v979_v13, %v980_v16  ;;  %1473 = vrcp.f32 %v827_v52 }
 0x3dd   :  { %v1045_v20 = vrot.slane %v1044_v32, 1  ;;  %v1047_v54 = vsel %vm705_vm0, %v1009_v22, 0.0  ;;  %v987_v18 = vrot.slane %v986_v61, 4  ;;  %v982_v29 = vsel %vm981_vm8, %v979_v13, %v980_v16 }
 0x3de   :  { %v1048_v21 = vrot.slane %v1047_v54, 4  ;;  %v983_v30 = vrot.slane %v982_v29, 1  ;;  %v833_v37 = vrot.slane %v832_v14, 1  ;;  %vm1090_vm11 = vcmask 1044484  }
 0x3df   :  { %v1046_v24 = vadd.f32 %v1045_v20, %v1044_v32  ;;  %vm988_vm9 = vcmp.lt.s32.totalorder %v986_v61, %v987_v18  ;;  %v839_v39 = vadd.f32 %v838_v23, %v837_v26  ;;  %v1085_v42 = vsel %vm1084_vm2, %v1886_v3, %v1864_v28 }
 0x3e0   :  { %v1049_v31 = vadd.f32 %v1048_v21, %v1047_v54  ;;  %v989_v36 = vsel %vm988_vm9, %v986_v61, %v987_v18  ;;  %vm984_vm10 = vcmp.lt.s32.totalorder %v982_v29, %v983_v30  ;;  %vm1092_vm15 = vcmask 1045509  }
 0x3e1   :  { %v1080_v11 = vmul.f32 %v1930_v15, %v1046_v24  ;;  %v990_v27 = vrot.slane %v989_v36, 2  ;;  %v985_v53 = vsel %vm984_vm10, %v982_v29, %v983_v30  ;;  %v1087_v15 = vsel %vm1086_vm12, %v1902_v34, %v1085_v42 }
 0x3e2   :  { %v1050_v19 = vrot.slane %v1049_v31, 2  ;;  %vm1002_vm14 = vcmp.eq.s32.totalorder %v1839_v33, %v985_v53  ;;  %v1089_v47 = vsel %vm1088_vm3, %v1920_v6, %v1087_v15  ;;  %vm1094_vm1 = vcmask 1046534   ;;  %v1474_v28 = vpop.eup %1473 }
 0x3e3   :  { %v1110_v41 = vsel %vm1090_vm11, %v1080_v11, %v1109_v10  ;;  %vm991_vm13 = vcmp.lt.s32.totalorder %v989_v36, %v990_v27  ;;  %v1010_v46 = vsel %vm1002_vm14, %v1910_v48, 0.0  ;;  %v1091_v55 = vsel %vm1090_vm11, %v1944_v40, %v1089_v47 }
 0x3e4   :  { %v1051_v44 = vadd.f32 %v1050_v19, %v1049_v31  ;;  %v992_v45 = vsel %vm991_vm13, %v989_v36, %v990_v27  ;;  %v1054_v50 = vsel %vm705_vm0, %v1010_v46, 0.0  ;;  %vm1096_vm2 = vcmask 1047559  }
 0x3e5   :  { %v993_v49 = vrot.slane %v992_v45, 1  ;;  %v1055_v34 = vrot.slane %v1054_v50, 4  ;;  %v834_v48 = vadd.f32 %v833_v37, %v832_v14  ;;  %v1093_v6 = vsel %vm1092_vm15, %v975_v12, %v1091_v55 }
 0x3e6   :  { %v1052_v3 = vrot.slane %v1051_v44, 1  ;;  %v1095_v59 = vsel %vm1094_vm1, %v985_v53, %v1093_v6  ;;  %v840_v60 = vrot.slane %v839_v39, 1 }
 0x3e7   :  { %vm994_vm12 = vcmp.lt.s32.totalorder %v992_v45, %v993_v49  ;;  %v1056_v35 = vadd.f32 %v1055_v34, %v1054_v50  ;;  %1475 = vrcp.f32 %v834_v48 }
 0x3e8   :  { %v995_v56 = vsel %vm994_vm12, %v992_v45, %v993_v49  ;;  %v1053_v58 = vadd.f32 %v1052_v3, %v1051_v44  ;;  %v841_v4 = vadd.f32 %v840_v60, %v839_v39 }
 0x3e9   :  { %vm1003_vm3 = vcmp.eq.s32.totalorder %v1839_v33, %v995_v56  ;;  %v1097_v62 = vsel %vm1096_vm2, %v995_v56, %v1095_v59  ;;  %v1057_v40 = vrot.slane %v1056_v35, 2 }
 0x3ea   :  { %v1011_v63 = vsel %vm1003_vm3, %v1940_v25, 0.0  ;;  %1098 = vst.msk [vmem:[#allocation14] sm:$0xff] %vm705_vm0, %v1097_v62  ;;  %v1081_v51 = vmul.f32 %v1474_v28, %v1053_v58  ;;  %1477 = vrcp.f32 %v841_v4 }
 0x3eb   :  { %v1061_v43 = vsel %vm705_vm0, %v1011_v63, 0.0  ;;  %1126 = dma.vmem_to_hbm [thread:$0]  %s1122_s13, 128, %s1124_s19, [#allocation4]   ;;  %v1058_v0 = vadd.f32 %v1057_v40, %v1056_v35 }
 0x3ec   :  { %v1062_v1 = vrot.slane %v1061_v43, 4  ;;  %v1111_v2 = vsel %vm1092_vm15, %v1081_v51, %v1110_v41 }
 0x3ed   :  { %v1059_v7 = vrot.slane %v1058_v0, 1  ;;  %v1476_v8 = vpop.eup %1475 }
 0x3ee   :  { %v1063_v5 = vadd.f32 %v1062_v1, %v1061_v43 }
 0x3ef   :  { %v1060_v38 = vadd.f32 %v1059_v7, %v1058_v0 }
 0x3f0   :  { %v1064_v33 = vrot.slane %v1063_v5, 2  ;;  %v1478_v32 = vpop.eup %1477 }
 0x3f1   :  { %v1082_v57 = vmul.f32 %v1476_v8, %v1060_v38 }
 0x3f2   :  { %v1065_v25 = vadd.f32 %v1064_v33, %v1063_v5 }
 0x3f3   :  { %v1112_v26 = vsel %vm1094_vm1, %v1082_v57, %v1111_v2 }
 0x3f4   :  { %v1066_v9 = vrot.slane %v1065_v25, 1 }
 0x3f6   :  { %v1067_v10 = vadd.f32 %v1066_v9, %v1065_v25 }
 0x3f8   :  { %v1083_v12 = vmul.f32 %v1478_v32, %v1067_v10 }
 0x3fa   :  { %v1113_v13 = vsel %vm1096_vm2, %v1083_v12, %v1112_v26 }
 0x3fb   :  { %1115 = vst.msk [vmem:[#allocation15] sm:$0xff] %vm705_vm0, %v1113_v13 }
 0x3fc   :  { %1137 = dma.vmem_to_hbm [thread:$0]  %s1133_s20, 128, %s1135_s23, [#allocation16]  }
 0x3fd   :  { %1703 = dma.done.wait [#allocation4], 128  }
 0x3fe   :  { %1704 = vsyncadd [#allocation4], 4294967168 }
 0x3ff   :  { %1705 = dma.done.wait [#allocation16], 128  }
 0x400   :  { %1706 = vsyncadd [#allocation16], 4294967168 }
 0x401   :  { %1146 = vsyncpa [#allocation3], 1 }
 0x402   :  { %1147 = vsyncpa [#allocation6], 1 }
 0x403   :  { %1148 = vsyncpa [#allocation9], 1 }
 0x404   :  { %1149 = vsyncpa [#allocation12], 1 }
 0x405   :  { %1150 = vsyncpa [#allocation4], 1 }
 0x406   :  { %1151 = vsyncpa [#allocation16], 1 }

</bundles_post_ra>
